<compile_context>
chip_gen: v7x
topology: tpu7x:2x2x1
jax: 0.10.0
libtpu: 0.0.40
codegen_flags: <defaults>
</compile_context>

<pallas_src>
import numpy as np
import jax
import jax.numpy as jnp
from jax import lax
from jax.experimental import pallas as pl
from jax.experimental.pallas import tpu as pltpu


# Above this many input H*W elements the fused kron(A_h, A_w) weight
# ((H*W) x (4*H*W), grows quadratically) is abandoned for the separable path.
_FUSED_HW_MAX = 512                      # kron weight <= 512*2048*4 B = 4 MiB

_VMEM_STEP_BUDGET = 24 * 1024 * 1024     # per grid step: 2x in + 2x out + weights
_VMEM_LIMIT_BYTES = 32 * 1024 * 1024     # >= v5e default (16 MiB), <= v7x physical

_PREC = jax.lax.Precision.HIGHEST        # near-f32 MXU accuracy for f32 inputs


# --------------------- interpolation weight construction ------------------- #
def _linear_interp_matrix(in_size, out_size):
    """Dense 1-D linear-interpolation matrix (out, in), PyTorch
    align_corners=True semantics: src = o * (in-1)/(out-1)."""
    A = np.zeros((out_size, in_size), np.float32)
    if out_size == 1 or in_size == 1:
        A[:, 0] = 1.0
        return A
    scale = (in_size - 1) / (out_size - 1)
    for o in range(out_size):
        s = o * scale
        i0 = min(int(np.floor(s)), in_size - 1)
        i1 = min(i0 + 1, in_size - 1)
        f = s - i0
        A[o, i0] += 1.0 - f
        A[o, i1] += f
    return A


def _depth_taps(in_size, out_size):
    """Static (i0, i1, frac) taps for the 2-tap depth lerp (align_corners)."""
    if out_size == 1 or in_size == 1:
        return [(0, 0, 0.0)] * out_size
    scale = (in_size - 1) / (out_size - 1)
    taps = []
    for o in range(out_size):
        s = o * scale
        i0 = min(int(np.floor(s)), in_size - 1)
        i1 = min(i0 + 1, in_size - 1)
        taps.append((i0, i1, float(s - i0)))
    return taps


# ------------------------------ spec helpers -------------------------------- #
def _const_weight_spec(shape):
    """BlockSpec for a grid-invariant weight: single-buffered when supported
    (constant index_map -> double-buffering it only wastes VMEM)."""
    ndim = len(shape)
    kwargs = {}
    if hasattr(pl, "Buffered"):
        kwargs["pipeline_mode"] = pl.Buffered(1)
    return pl.BlockSpec(shape, lambda i: (0,) * ndim, **kwargs)


def _pick_block_volumes(num_volumes, in_bytes_per_volume, weight_bytes):
    """Volumes per grid step: out block is 8x the input bytes, everything
    double-buffered except weights -> ~18x input bytes per volume."""
    cap = max(1, (_VMEM_STEP_BUDGET - weight_bytes) // (18 * in_bytes_per_volume))
    bc = min(num_volumes, int(cap))
    if num_volumes >= 2:                         # keep >= 2 grid steps (megacore)
        bc = min(bc, max(1, num_volumes // 2))
    while num_volumes % bc:                      # whole blocks only
        bc -= 1
    return bc


# --------------------------------- wrapper ---------------------------------- #
def upsample_trilinear_2x(x, *, force_split=False):
    """x: (N, C, D, H, W) -> (N, C, 2D, 2H, 2W), trilinear, align_corners."""
    N, C, D, H, W = x.shape
    Do, Ho, Wo = 2 * D, 2 * H, 2 * W
    HW, HWo = H * W, Ho * Wo
    B = N * C
    dt = x.dtype
    itemsize = x.dtype.itemsize

    use_fused = (HW <= _FUSED_HW_MAX) and not force_split

    if use_fused:
        # ------------- fused H/W (kron) path, small feature maps ------------ #
        ah = _linear_interp_matrix(H, Ho)
        aw = _linear_interp_matrix(W, Wo)
        ahw_t = jnp.asarray(np.kron(ah, aw).T, dtype=dt)            # (HW, HWo)
        ad = jnp.asarray(_linear_interp_matrix(D, Do), dtype=dt)    # (Do, D)
        weight_bytes = (ahw_t.size + ad.size) * itemsize

        bc = _pick_block_volumes(B, D * HW * itemsize, weight_bytes)
        grid = (B // bc,)

        def kernel(x_ref, ahw_t_ref, ad_ref, o_ref):
            x_blk = x_ref[...]                                      # (bc, D, HW)
            # Fused H/W interpolation: one lane-axis matmul over bc*D rows.
            y = jnp.dot(x_blk.reshape(bc * D, HW), ahw_t_ref[...],
                        preferred_element_type=jnp.float32,
                        precision=_PREC)                            # (bc*D, HWo)
            y = y.reshape(bc, D, HWo).astype(dt)
            # Depth interpolation: one batched matmul, stationary A_d shared
            # across the bc volumes ('bod,bdk->bok').
            ad_b = jnp.broadcast_to(ad_ref[...], (bc, Do, D))
            out = lax.dot_general(
                ad_b, y,
                dimension_numbers=(((2,), (1,)), ((0,), (0,))),
                preferred_element_type=jnp.float32,
                precision=_PREC)                                    # (bc, Do, HWo)
            o_ref[...] = out.astype(o_ref.dtype)

        x2 = x.reshape(B, D, HW)                                    # free reshape
        out2 = pl.pallas_call(
            kernel,
            out_shape=jax.ShapeDtypeStruct((B, Do, HWo), dt),
            grid=grid,
            in_specs=[
                pl.BlockSpec((bc, D, HW), lambda i: (i, 0, 0)),
                _const_weight_spec((HW, HWo)),
                _const_weight_spec((Do, D)),
            ],
            # Output lane dim = 4*H*W -> lane-dense stores when H*W % 32 == 0.
            out_specs=pl.BlockSpec((bc, Do, HWo), lambda i: (i, 0, 0)),
            compiler_params=pltpu.CompilerParams(
                dimension_semantics=("parallel",),
                vmem_limit_bytes=_VMEM_LIMIT_BYTES),
        )(x2, ahw_t, ad)
        return out2.reshape(N, C, Do, Ho, Wo)                       # free reshape

    # ------------------- fully separable path, large H*W -------------------- #
    aw_t = jnp.asarray(_linear_interp_matrix(W, Wo).T, dtype=dt)    # (W, Wo)
    ah = jnp.asarray(_linear_interp_matrix(H, Ho), dtype=dt)        # (Ho, H)
    taps = _depth_taps(D, Do)
    weight_bytes = (aw_t.size + ah.size) * itemsize

    bc = _pick_block_volumes(B, D * HW * itemsize, weight_bytes)
    grid = (B // bc,)

    def kernel(x_ref, aw_t_ref, ah_ref, o_ref):
        x_blk = x_ref[...]                                          # (bc, D*H, W)
        # W pass: lane-axis matmul over all bc*D*H rows.
        y = jnp.dot(x_blk.reshape(bc * D * H, W), aw_t_ref[...],
                    preferred_element_type=jnp.float32,
                    precision=_PREC)                                # (bc*D*H, Wo)
        y = y.reshape(bc * D, H, Wo).astype(dt)     # layout-cheap when H % 8 == 0
        # H pass: batched matmul, stationary A_h shared across bc*D rows.
        ah_b = jnp.broadcast_to(ah_ref[...], (bc * D, Ho, H))
        y = lax.dot_general(
            ah_b, y,
            dimension_numbers=(((2,), (1,)), ((0,), (0,))),
            preferred_element_type=jnp.float32,
            precision=_PREC)                                        # (bc*D, Ho, Wo)
        y = y.reshape(bc, D, Ho, Wo)                # leading-dim split: free
        # D pass: 2-tap lerp on the VPU, unrolled with static indices (rides in
        # spare VALU slots instead of issuing near-empty MXU pushes).
        for o, (i0, i1, f) in enumerate(taps):
            if f == 0.0 or i0 == i1:
                v = y[:, i0]
            else:
                v = (1.0 - f) * y[:, i0] + f * y[:, i1]
            o_ref[:, o] = v.astype(o_ref.dtype)

    x2 = x.reshape(B, D * H, W)                                     # free reshape
    out2 = pl.pallas_call(
        kernel,
        out_shape=jax.ShapeDtypeStruct((B, Do, Ho, Wo), dt),
        grid=grid,
        in_specs=[
            pl.BlockSpec((bc, D * H, W), lambda i: (i, 0, 0)),
            _const_weight_spec((W, Wo)),
            _const_weight_spec((Ho, H)),
        ],
        # 4D output keeps Ho on sublanes / Wo on lanes (lane-dense when
        # Wo % 128 == 0, e.g. W >= 64 — the regime where this path runs).
        out_specs=pl.BlockSpec((bc, Do, Ho, Wo), lambda i: (i, 0, 0, 0)),
        compiler_params=pltpu.CompilerParams(
            dimension_semantics=("parallel",),
            vmem_limit_bytes=_VMEM_LIMIT_BYTES),
    )(x2, aw_t, ah)
    return out2.reshape(N, C, Do, Ho, Wo)                           # free reshape


# ---------------------------- pure-JAX reference ---------------------------- #
def upsample_trilinear_2x_ref(x):
    """Independent gather + lerp reference (PyTorch align_corners=True)."""
    N, C, D, H, W = x.shape

    def idx_w(in_size, out_size):
        s = jnp.arange(out_size, dtype=jnp.float32) * ((in_size - 1) / (out_size - 1))
        i0 = jnp.clip(jnp.floor(s).astype(jnp.int32), 0, in_size - 1)
        i1 = jnp.minimum(i0 + 1, in_size - 1)
        f = (s - i0.astype(jnp.float32)).astype(x.dtype)
        return i0, i1, f

    d0, d1, fd = idx_w(D, 2 * D)
    h0, h1, fh = idx_w(H, 2 * H)
    w0, w1, fw = idx_w(W, 2 * W)

    y = x[..., w0] * (1.0 - fw) + x[..., w1] * fw
    y = y[..., h0, :] * (1.0 - fh)[:, None] + y[..., h1, :] * fh[:, None]
    y = (y[..., d0, :, :] * (1.0 - fd)[:, None, None]
         + y[..., d1, :, :] * fd[:, None, None])
    return y


# ----------------------------------- main ----------------------------------- #
if __name__ == "__main__":
    key = jax.random.PRNGKey(0)

    # Small shapes consistent with UpSample: batch=2, channels=4, D=H=W=8.
    N, C, D, H, W = 2, 4, 8, 8, 8
    x = jax.random.normal(key, (N, C, D, H, W), dtype=jnp.float32)

    ref = upsample_trilinear_2x_ref(x)

    # Fused-kron path (default at this feature-map size).
    out = jax.block_until_ready(upsample_trilinear_2x(x))
    assert out.shape == (N, C, 2 * D, 2 * H, 2 * W)
    err = float(jnp.max(jnp.abs(out - ref)))
    assert err < 5e-4, f"fused path max abs err {err}"

    # Separable path (large-H*W fallback), exercised explicitly so it is
    # compile-tested, not a dead branch.
    out_s = jax.block_until_ready(upsample_trilinear_2x(x, force_split=True))
    err_s = float(jnp.max(jnp.abs(out_s - ref)))
    assert err_s < 5e-4, f"split path max abs err {err_s}"

    print("KERNEL_OK")
</pallas_src>

<mosaic_0001>
module attributes {stable_mosaic.version = 11 : i64} {
  func.func @kernel(%arg0: i32, %arg1: memref<4x8x64xf32, #tpu.memory_space<vmem>>, %arg2: memref<64x256xf32, #tpu.memory_space<vmem>>, %arg3: memref<16x8xf32, #tpu.memory_space<vmem>>, %arg4: memref<4x16x256xf32, #tpu.memory_space<vmem>>) attributes {dimension_semantics = [#tpu.dimension_semantics<parallel>], iteration_bounds = array<i64: 2>, scalar_prefetch = 0 : i64, scratch_operands = 0 : i64, tpu.core_type = #tpu.core_type<tc>, window_params = [{transform_indices = @transform_0, window_bounds = array<i64: 4, 8, 64>}, {pipeline_mode = #tpu.pipeline_mode<synchronous>, transform_indices = @transform_1, window_bounds = array<i64: 64, 256>}, {pipeline_mode = #tpu.pipeline_mode<synchronous>, transform_indices = @transform_2, window_bounds = array<i64: 16, 8>}, {transform_indices = @transform_3, window_bounds = array<i64: 4, 16, 256>}]} {
    %c0 = arith.constant 0 : index
    %c0_0 = arith.constant 0 : index
    %c0_1 = arith.constant 0 : index
    %0 = vector.load %arg1[%c0, %c0_0, %c0_1] : memref<4x8x64xf32, #tpu.memory_space<vmem>>, vector<4x8x64xf32>
    %1 = vector.shape_cast %0 : vector<4x8x64xf32> to vector<32x64xf32>
    %c0_2 = arith.constant 0 : index
    %c0_3 = arith.constant 0 : index
    %2 = vector.load %arg2[%c0_2, %c0_3] : memref<64x256xf32, #tpu.memory_space<vmem>>, vector<64x256xf32>
    %cst = arith.constant dense<0.000000e+00> : vector<32x256xf32>
    %3 = tpu.matmul %1, %2, %cst {dimension_numbers = #tpu.dot_dimension_numbers<[1], [0], [0], [1], [0, 0, 1, 1], [], []>, precision = #tpu.contract_precision<fp32>} : vector<32x64xf32>, vector<64x256xf32>, vector<32x256xf32> -> vector<32x256xf32>
    %4 = vector.shape_cast %3 : vector<32x256xf32> to vector<4x8x256xf32>
    %c0_4 = arith.constant 0 : index
    %c0_5 = arith.constant 0 : index
    %5 = vector.load %arg3[%c0_4, %c0_5] : memref<16x8xf32, #tpu.memory_space<vmem>>, vector<16x8xf32>
    %6 = vector.shape_cast %5 : vector<16x8xf32> to vector<1x16x8xf32>
    %7 = vector.broadcast %6 : vector<1x16x8xf32> to vector<4x16x8xf32>
    %cst_6 = arith.constant dense<0.000000e+00> : vector<4x16x256xf32>
    %8 = tpu.matmul %7, %4, %cst_6 {dimension_numbers = #tpu.dot_dimension_numbers<[2], [1], [1], [2], [0, 0, 0, 1, 1, 2], [0], [0]>, precision = #tpu.contract_precision<fp32>} : vector<4x16x8xf32>, vector<4x8x256xf32>, vector<4x16x256xf32> -> vector<4x16x256xf32>
    %c0_7 = arith.constant 0 : index
    %c0_8 = arith.constant 0 : index
    %c0_9 = arith.constant 0 : index
    %9 = vector.load %arg4[%c0_7, %c0_8, %c0_9] : memref<4x16x256xf32, #tpu.memory_space<vmem>>, vector<4x16x256xf32>
    tpu.vector_store %arg4[%c0_7, %c0_8, %c0_9], %8 {strides = array<i32>} : memref<4x16x256xf32, #tpu.memory_space<vmem>>, vector<4x16x256xf32>,
    return
  }
  func.func @transform_0(%arg0: i32) -> (i32, i32, i32) {
    %c0_i32 = arith.constant 0 : i32
    %c0_i32_0 = arith.constant 0 : i32
    %c0_i32_1 = arith.constant 0 : i32
    return %arg0, %c0_i32, %c0_i32_0 : i32, i32, i32
  }
  func.func @transform_1(%arg0: i32) -> (i32, i32) {
    %c0_i32 = arith.constant 0 : i32
    %c0_i32_0 = arith.constant 0 : i32
    %c0_i32_1 = arith.constant 0 : i32
    return %c0_i32, %c0_i32_0 : i32, i32
  }
  func.func @transform_2(%arg0: i32) -> (i32, i32) {
    %c0_i32 = arith.constant 0 : i32
    %c0_i32_0 = arith.constant 0 : i32
    %c0_i32_1 = arith.constant 0 : i32
    return %c0_i32, %c0_i32_0 : i32, i32
  }
  func.func @transform_3(%arg0: i32) -> (i32, i32, i32) {
    %c0_i32 = arith.constant 0 : i32
    %c0_i32_0 = arith.constant 0 : i32
    %c0_i32_1 = arith.constant 0 : i32
    return %arg0, %c0_i32, %c0_i32_0 : i32, i32, i32
  }
}

</mosaic_0001>

<bundles_post_ra>
// kernel: tpu_custom_call.1
= control target key start
LH: loop header
LB: loop body
LE: loop exit
PB: predicated region body
PF: predicated region fallthrough
CT: control target
= control target key end

     0   :  { %8 = vsyncpa [#allocation3], 0  ;;  %s4339_s0 = inlined_call_operand.hbm [shape: f32[8,8,64], index: 0, kind: input, shape index: {}]   ;;  %s4340_s1 = inlined_call_operand.hbm [shape: f32[64,256], index: 1, kind: input, shape index: {}]   ;;  %s4341_s2 = inlined_call_operand.vmem [shape: f32[16,8], index: 2, kind: input, shape index: {}]   ;;  %s4342_s3 = inlined_call_operand.hbm [shape: f32[8,16,256], index: 3, kind: output, shape index: {}]  }
   0x1   :  { %10 = vsyncpa [#allocation3 + $0x1], 0 }
   0x2   :  { %11 = vsyncpa [#allocation6], 0 }
   0x3   :  { %12 = vsyncpa [#allocation4], 0 }
   0x4   :  { %14 = vsyncpa [#allocation4 + $0x1], 0  ;;  %s3672_s12 = smov 0   ;;  %s3674_s13 = smov 0  }
   0x5   :  { %s3676_s14 = smov 0   ;;  %s3678_s15 = smov 0  }
   0x6 LB: > { %s3693_s16 = sadd.s32 4294967295, %s3640_s15   ;;  %s3212_s17 = sadd.s32 4294967294, %s3640_s15   ;;  %s3640_s15 = sphi %s3678_s15, %s4368_s15   ;;  %s3636_s14 = sphi %s3676_s14, %s4367_s14   ;;  %s3632_s13 = sphi %s3674_s13, %s4366_s13   ;;  %s3628_s12 = sphi %s3672_s12, %s4365_s12  }
   0x7   : > { %p40_p0 = scmp.ne.s32.totalorder %s3632_s13, %s3628_s12  ;;  %p4343_p1 = scmp.eq.s32.totalorder %s3693_s16, 0 }
   0x8   : > { %p112_p3 = scmp.eq.s32.totalorder %s3212_s17, 1  ;;  %p3213_p5 = scmp.ge.s32.totalorder %s3640_s15, 1 }
   0x9   : > { %p3702_p4 = por %p4343_p1, %p40_p0  ;;  %p119_p7 = scmp.lt.s32.totalorder %s3640_s15, 3 }
   0xa   : > { %p3707_p6 = por %p112_p3, %p40_p0  ;;  %s3642_s21 = smov [#allocation5]  }
   0xb   : > { %s4349_s18 = scalar_select %p3702_p4, 1, 0 }
   0xc   : > { %s4350_s19 = scalar_select %p3707_p6, 1, 0 }
   0xd   : > { %p3712_p8 = pnand %p3213_p5, %p119_p7  ;;  %s131_s22 = sshll.u32 %s3642_s21, 4  ;;  %s3716_s22 = int_to_ptr.vmem [resolvable:$true] %s131_s22 }
   0xe   : > { %s3728_s24 = sadd.s32 1, %s3640_s15   ;;  %s27_s25 = sadd.s32 1, %s3636_s14 }
   0xf   : > { %s4351_s20 = scalar_select %p3712_p8, 1, 0 }
  0x10   : > { %p3456_p9 = pneg %p3712_p8  ;;  %s24_s26 = ssub.s32 %s3640_s15, %s3728_s24 }
  0x11   : > { %s3512_s29 = scalar_lea.hbm %s4340_s1, 2048 }
  0x12   : > { %p3723_p11 = pnand %p3456_p9, %p4343_p1  ;;  %p3513_p12 = scmp.ne.s32.totalorder %s4340_s1, %s3512_s29 }
  0x13   : > { %p3519_p5 = scmp.lt.u32.totalorder %s3512_s29, %s4340_s1 }
  0x14   : > { %p3514_p13 = pneg %p3723_p11 }
  0x16   : > { %p3515_p0 = pnand %p3514_p13, %p3513_p12 }
  0x18   : > { %p3516_p3 = pneg %p3515_p0 }
  0x1a   : > { %p3521_p7 = pnand %p3519_p5, %p3516_p3 }
  0x1c   : > { %3524 = shalt.err (!%p3521_p7)
}
  0x1d   : > { %s3525_s7 = scalar_lea.vmem %s3716_s22, 2048  ;;  %p3533_p2 = scmp.lt.s32.totalorder %s3716_s22, %s3716_s22 }
  0x1e   : > { %p3526_p9 = scmp.ne.s32.totalorder %s3716_s22, %s3525_s7  ;;  %p3534_p6 = scmp.lt.s32.totalorder %s3525_s7, %s3525_s7 }
  0x20   : > { %p3528_p10 = pnand %p3526_p9, %p3514_p13  ;;  %p3535_p4 = por %p3534_p6, %p3533_p2 }
  0x22   : > { %p3529_p1 = pneg %p3528_p10 }
  0x24   : > { %p3536_p8 = pnand %p3535_p4, %p3529_p1 }
  0x26   : > { %3539 = shalt.err (!%p3536_p8)
}
  0x27   : > { %s3643_s8 = smov 256   ;;  %s3644_s9 = smov 16  }
  0x28   : > { %3459 = dma.hbm_to_vmem [thread:$0]  (!%p3723_p11), %s4340_s1, 2048, %s3716_s22, [#allocation6], %s3643_s8, %s3643_s8, %s3644_s9  }
  0x29   : > { %p25_p2 = scmp.eq.s32.totalorder %s24_s26, 0  ;;  %p34_p1 = scmp.ne.s32.totalorder %s3636_s14, %s3632_s13 }
  0x2a   : > { %p35_p4 = scmp.eq.s32.totalorder %s3640_s15, 0  ;;  %p3469_p6 = scmp.lt.s32.totalorder %s3640_s15, 2 }
  0x2b   : > { %s3759_s17 = scalar_select %p25_p2, %s3636_s14, %s27_s25  }
  0x2c   : > { %p36_p8 = por %p35_p4, %p34_p1  ;;  %p4353_p10 = scmp.eq.s32.totalorder %s3693_s16, 1 }
  0x2d   : > { %s148_s27 = sand.u32 1, %s3636_s14   ;;  %s3229_s28 = sshll.u32 %s3640_s15, 9 }
  0x2e   : > { %p3763_p12 = por %p4353_p10, %p34_p1  ;;  %s3216_s29 = sshll.u32 %s148_s27, 5 }
  0x2f   : > { %s3772_s4 = scalar_lea.hbm %s4339_s0, %s3229_s28  ;;  %s152_s22 = scalar_lea.vmem [#allocation2], %s3216_s29 }
  0x30   : > { %s159_s25 = sshll.u32 %s152_s22, 4  ;;  %p3774_p11 = pnand %p3469_p6, %p36_p8  ;;  %s3778_s25 = int_to_ptr.vmem [resolvable:$true] %s159_s25 }
  0x31   : > { %s3780_s5 = scalar_lea.sflag [#allocation3], %s148_s27  ;;  %s3540_s6 = scalar_lea.hbm %s3772_s4, 512 }
  0x32   : > { %p3541_p13 = scmp.ne.s32.totalorder %s3772_s4, %s3540_s6  ;;  %p3542_p0 = pneg %p3774_p11 }
  0x33   : > { %s3545_s9 = scalar_lea.hbm %s4339_s0, 1024  ;;  %p3546_p7 = scmp.lt.u32.totalorder %s3772_s4, %s4339_s0 }
  0x34   : > { %p3543_p3 = pnand %p3542_p0, %p3541_p13  ;;  %p3547_p9 = scmp.lt.u32.totalorder %s3545_s9, %s3540_s6 }
  0x35   : > { %p3549_p1 = scmp.lt.u32.totalorder %s3540_s6, %s3772_s4 }
  0x36   : > { %p3544_p5 = pneg %p3543_p3  ;;  %p3548_p2 = por %p3547_p9, %p3546_p7 }
  0x38   : > { %p3550_p4 = por %p3549_p1, %p3548_p2 }
  0x3a   : > { %p3551_p6 = pnand %p3550_p4, %p3544_p5 }
  0x3c   : > { %3554 = shalt.err (!%p3551_p6)
}
  0x3d   : > { %s3555_s27 = scalar_lea.vmem %s3778_s25, 512  ;;  %s3645_s28 = smov [#allocation2]  }
  0x3e   : > { %p3556_p8 = scmp.ne.s32.totalorder %s3778_s25, %s3555_s27  ;;  %s3560_s29 = sshll.u32 %s3645_s28, 4  ;;  %s3561_s29 = int_to_ptr.vmem [resolvable:$false] %s3560_s29 }
  0x3f   : > { %s3562_s23 = scalar_lea.vmem %s3561_s29, 1024  ;;  %p3563_p3 = scmp.lt.s32.totalorder %s3778_s25, %s3561_s29 }
  0x40   : > { %p3558_p10 = pnand %p3556_p8, %p3542_p0  ;;  %p3564_p7 = scmp.lt.s32.totalorder %s3562_s23, %s3555_s27 }
  0x42   : > { %p3559_p13 = pneg %p3558_p10  ;;  %p3565_p9 = por %p3564_p7, %p3563_p3 }
  0x44   : > { %p3566_p2 = pnand %p3565_p9, %p3559_p13 }
  0x46   : > { %3569 = shalt.err (!%p3566_p2)
}
  0x47   : > { %s3646_s30 = smov 128   ;;  %s3647_s22 = smov 8  }
  0x48   : > { %3463 = dma.hbm_to_vmem [thread:$0]  (!%p3774_p11), %s3772_s4, 512, %s3778_s25, %s3780_s5, %s3646_s30, %s3646_s30, %s3647_s22  }
  0x49   : > { %p4356_p0 = scmp.ne.s32.totalorder %s4351_s20, 0 }
  0x4a   : > { %s3811_s6 = sand.u32 (!%p4356_p0), 1, %s3632_s13   ;;  %p4357_p5 = scmp.ne.s32.totalorder (!%p4356_p0), %s4349_s18, 0 }
  0x4b   : > { %171 = sbr.rel (%p4356_p0) target bundleno = 784 (0x310), region = 32  ;;  %s3220_s7 = sshll.u32 (!%p4356_p0), %s3811_s6, 5 }
  0x4c   : > { %s174_s8 = scalar_lea.sflag (!%p4356_p0), [#allocation3], %s3811_s6  ;;  %s3815_s9 = scalar_lea.vmem (!%p4356_p0), [#allocation2], %s3220_s7 }
  0x52   : > { %3615 = dma.done.wait (%p4357_p5), %s174_s8, 512  }
  0x53   : > { %3617 = vsyncadd (%p4357_p5), %s174_s8, 4294966784  ;;  %p4358_p11 = scmp.eq.s32.totalorder %s3693_s16, 0 }
  0x55   : > { %3619 = dma.done.wait (%p4358_p11), [#allocation6], 2048   ;;  %p4359_p1 = pmov %p4358_p11 }
  0x56   : > { %v3648_v0 = vmov 0.0   ;;  %v211_v1 = vld [vmem:[#allocation5 + $0x8] sm:$0xff]  ;;  %v213_v2 = vld [vmem:[#allocation5 + $0x18] sm:$0xff]  ;;  %v210_v3 = vld [vmem:[#allocation5] sm:$0xff]  ;;  %vm226_vm0 = vcmask 523264   ;;  %vm1035_vm1 = vcmask 64512  }
  0x57   : > { %3621 = vsyncadd (%p4359_p1), [#allocation6], 4294965248  ;;  %319 = vmatprep.mubr.f32.mxu0 %v3648_v0  ;;  %1108 = vmatprep.mubr.f32.mxu1 %v3648_v0  ;;  %v239_v4 = vand.u32 4294901760, %v211_v1  ;;  %v243_v5 = vand.u32 4294901760, %v213_v2  ;;  %v212_v6 = vld [vmem:[#allocation5 + $0x10] sm:$0xff]  ;;  %v241_v7 = vand.u32 4294901760, %v210_v3 }
  0x58   : > { %v215_v8 = vld [vmem:[#allocation5 + $0x28] sm:$0xff]  ;;  %v217_v9 = vld [vmem:[#allocation5 + $0x38] sm:$0xff]  ;;  %v245_v10 = vand.u32 4294901760, %v212_v6  ;;  %v214_v13 = vld [vmem:[#allocation5 + $0x20] sm:$0xff]  ;;  %s3222_s26 = sshll.u32 %s3811_s6, 7  ;;  %s3231_s10 = sshll.u32 %s3693_s16, 11 }
  0x59   : > { %v247_v11 = vand.u32 4294901760, %v215_v8  ;;  %v251_v12 = vand.u32 4294901760, %v217_v9  ;;  %v216_v14 = vld [vmem:[#allocation5 + $0x30] sm:$0xff]  ;;  %v219_v15 = vld [vmem:[#allocation5 + $0x48] sm:$0xff]  ;;  %v3827_v16 = vpack.c.bf16 %v243_v5, %v239_v4  ;;  %v3829_v17 = vsub.f32 %v211_v1, %v239_v4  ;;  %v221_v20 = vld [vmem:[#allocation5 + $0x58] sm:$0xff]  ;;  %s4270_s5 = scalar_lea.vmem [#allocation7], %s3222_s26  ;;  %s4291_s29 = scalar_lea.hbm %s4342_s3, %s3231_s10 }
  0x5a   : > { %v3831_v18 = vsub.f32 %v213_v2, %v243_v5  ;;  %v3833_v19 = vsub.f32 %v210_v3, %v241_v7  ;;  %v218_v21 = vld [vmem:[#allocation5 + $0x40] sm:$0xff]  ;;  %v220_v22 = vld [vmem:[#allocation5 + $0x50] sm:$0xff]  ;;  %v3835_v23 = vpack.c.bf16 %v245_v10, %v241_v7  ;;  %v3837_v24 = vsub.f32 %v212_v6, %v245_v10  ;;  %v223_v27 = vld [vmem:[#allocation5 + $0x68] sm:$0xff]  ;;  %s3129_s11 = sshll.u32 %s4270_s5, 4  ;;  %s3115_s16 = scalar_lea.sflag [#allocation4], %s3811_s6  ;;  %s4293_s11 = int_to_ptr.vmem [resolvable:$true] %s3129_s11 }
  0x5b   : > { %v3839_v25 = vpack.c.bf16 %v251_v12, %v247_v11  ;;  %v3841_v26 = vsub.f32 %v215_v8, %v247_v11  ;;  %3233 = vmatprep.subr.bf16.mxu0 %v3827_v16  ;;  %v3844_v28 = vsub.f32 %v217_v9, %v251_v12  ;;  %v249_v29 = vand.u32 4294901760, %v214_v13  ;;  %v225_v35 = vld [vmem:[#allocation5 + $0x78] sm:$0xff]  ;;  %v222_v37 = vld [vmem:[#allocation5 + $0x60] sm:$0xff]  ;;  %v224_v42 = vld [vmem:[#allocation5 + $0x70] sm:$0xff]  ;;  %s3570_s23 = scalar_lea.vmem %s4293_s11, 2048  ;;  %s3649_s30 = smov [#allocation7]  }
  0x5c   : > { %v253_v30 = vand.u32 4294901760, %v216_v14  ;;  %v255_v31 = vand.u32 4294901760, %v219_v15  ;;  %3235 = vmatpush1.bf16.msra.mxu0 %v3835_v23  ;;  %v259_v32 = vand.u32 4294901760, %v221_v20  ;;  %v257_v33 = vand.u32 4294901760, %v218_v21  ;;  %v206_v43 = vld [vmem:[%s3815_s9] sm:$0xff]  ;;  %v207_v56 = vld [vmem:[%s3815_s9 + $0x8] sm:$0xff]  ;;  %p3571_p4 = scmp.ne.s32.totalorder %s4293_s11, %s3570_s23 }
  0x5d   : > { %v261_v34 = vand.u32 4294901760, %v220_v22  ;;  %v263_v36 = vand.u32 4294901760, %v223_v27  ;;  %3237 = vmatprep.subr.bf16.mxu0 %v3839_v25  ;;  %v3850_v39 = vsub.f32 %v214_v13, %v249_v29  ;;  %v267_v49 = vand.u32 4294901760, %v225_v35  ;;  %s3574_s22 = sshll.u32 %s3649_s30, 4  ;;  %s3575_s22 = int_to_ptr.vmem [resolvable:$false] %s3574_s22 }
  0x5e   : > { %v3848_v38 = vpack.c.bf16 %v253_v30, %v249_v29  ;;  %v3852_v40 = vsub.f32 %v216_v14, %v253_v30  ;;  %v3854_v41 = vsub.f32 %v219_v15, %v255_v31  ;;  %v3857_v44 = vpack.c.bf16 %v259_v32, %v255_v31  ;;  %p3572_p6 = pnand %p3571_p4, %p3763_p12  ;;  %s3576_s7 = scalar_lea.vmem %s3575_s22, 4096 }
  0x5f   : > { %v3859_v45 = vsub.f32 %v221_v20, %v259_v32  ;;  %v3861_v46 = vpack.c.bf16 %v261_v34, %v257_v33  ;;  %v3863_v47 = vsub.f32 %v218_v21, %v257_v33  ;;  %v3865_v48 = vsub.f32 %v220_v22, %v261_v34  ;;  %v208_v22 = vld [vmem:[%s3815_s9 + $0x10] sm:$0xff]  ;;  %p3577_p10 = scmp.lt.s32.totalorder %s4293_s11, %s3575_s22  ;;  %p3578_p13 = scmp.lt.s32.totalorder %s3576_s7, %s3570_s23 }
  0x60   : > { %v3867_v50 = vsub.f32 %v223_v27, %v263_v36  ;;  %v265_v51 = vand.u32 4294901760, %v222_v37  ;;  %3239 = vmatpush1.bf16.msra.mxu0 %v3848_v38  ;;  %v269_v52 = vand.u32 4294901760, %v224_v42  ;;  %v228_v53 = vsel %vm226_vm0, %v206_v43, 0  ;;  %p3573_p8 = pneg %p3572_p6 }
  0x61   : > { %v366_v54 = vand.u32 4294901760, %v3829_v17  ;;  %v378_v55 = vand.u32 4294901760, %v3831_v18  ;;  %3241 = vmatprep.subr.bf16.mxu0 %v3857_v44  ;;  %v3875_v57 = vpack.c.bf16 %v267_v49, %v263_v36  ;;  %v3877_v58 = vsub.f32 %v225_v35, %v267_v49  ;;  %p3579_p3 = por %p3578_p13, %p3577_p10 }
  0x62   : > { %v3879_v59 = vsub.f32 %v222_v37, %v265_v51  ;;  %v3881_v60 = vand.u32 4294901760, %v228_v53  ;;  %v3883_v61 = vpack.c.bf16 %v269_v52, %v265_v51  ;;  %v3885_v62 = vsub.f32 %v224_v42, %v269_v52 }
  0x63   : > { %v367_v63 = vsub.f32 %v3829_v17, %v366_v54  ;;  %v379_v1 = vsub.f32 %v3831_v18, %v378_v55  ;;  %v372_v3 = vand.u32 4294901760, %v3833_v19  ;;  %v384_v4 = vand.u32 4294901760, %v3837_v24  ;;  %p3580_p7 = pnand %p3579_p3, %p3573_p8 }
  0x64   : > { %v3894_v2 = vsub.f32 %v228_v53, %v3881_v60  ;;  %v231_v5 = vsel %vm226_vm0, %v207_v56, 0  ;;  %3243 = vmatpush1.bf16.msra.mxu0 %v3861_v46  ;;  %v390_v9 = vand.u32 4294901760, %v3841_v26  ;;  %v402_v13 = vand.u32 4294901760, %v3844_v28  ;;  %v209_v56 = vld [vmem:[%s3815_s9 + $0x18] sm:$0xff] }
  0x65   : > { %v368_v6 = vand.u32 4294901760, %v367_v63  ;;  %v380_v7 = vand.u32 4294901760, %v379_v1  ;;  %v3900_v8 = vand.u32 4294901760, %v231_v5  ;;  %3245 = vmatprep.subr.bf16.mxu0 %v3875_v57  ;;  %v373_v11 = vsub.f32 %v3833_v19, %v372_v3 }
  0x66   : > { %v322_v10 = vand.u32 4294901760, %v3894_v2  ;;  %v385_v12 = vsub.f32 %v3837_v24, %v384_v4  ;;  %v391_v20 = vsub.f32 %v3841_v26, %v390_v9  ;;  %v396_v21 = vand.u32 4294901760, %v3850_v39 }
  0x67   : > { %v3248_v14 = vpack.c.bf16 %v380_v7, %v368_v6  ;;  %v3913_v15 = vsub.f32 %v231_v5, %v3900_v8  ;;  %v374_v29 = vand.u32 4294901760, %v373_v11  ;;  %v403_v31 = vsub.f32 %v3844_v28, %v402_v13 }
  0x68   : > { %v323_v27 = vsub.f32 %v3894_v2, %v322_v10  ;;  %v386_v30 = vand.u32 4294901760, %v385_v12  ;;  %3247 = vmatpush1.bf16.msra.mxu0 %v3883_v61  ;;  %v392_v33 = vand.u32 4294901760, %v391_v20  ;;  %v397_v34 = vsub.f32 %v3850_v39, %v396_v21 }
  0x69   : > { %v333_v32 = vand.u32 4294901760, %v3913_v15  ;;  %v408_v35 = vand.u32 4294901760, %v3852_v40  ;;  %3249 = vmatprep.subr.bf16.mxu0 %v3248_v14  ;;  %v404_v42 = vand.u32 4294901760, %v403_v31  ;;  %v234_v43 = vsel %vm226_vm0, %v208_v22, 0 }
  0x6a   : > { %v324_v36 = vand.u32 4294901760, %v323_v27  ;;  %v3250_v37 = vpack.c.bf16 %v386_v30, %v374_v29  ;;  %v398_v51 = vand.u32 4294901760, %v397_v34  ;;  %v3939_v53 = vand.u32 4294901760, %v234_v43 }
  0x6b   : > { %v334_v49 = vsub.f32 %v3913_v15, %v333_v32  ;;  %v409_v52 = vsub.f32 %v3852_v40, %v408_v35  ;;  %v3252_v63 = vpack.c.bf16 %v404_v42, %v392_v33  ;;  %v414_v1 = vand.u32 4294901760, %v3854_v41 }
  0x6c   : > { %325 = vmatmul.mubr.f32.vlgmr.msra.gmra.mrb[0].mxu0 %v324_v36  ;;  %v426_v5 = vand.u32 4294901760, %v3859_v45  ;;  %v420_v6 = vand.u32 4294901760, %v3863_v47  ;;  %v3947_v12 = vsub.f32 %v234_v43, %v3939_v53  ;;  %v432_v14 = vand.u32 4294901760, %v3865_v48 }
  0x6d   : > { %3251 = vmatpush1.bf16.msra.mxu0 %v3250_v37  ;;  %330 = vmatprep.mubr.f32.mxu0 %v3648_v0  ;;  %v335_v7 = vand.u32 4294901760, %v334_v49  ;;  %v410_v11 = vand.u32 4294901760, %v409_v52  ;;  %v415_v20 = vsub.f32 %v3854_v41, %v414_v1  ;;  %v237_v29 = vsel %vm226_vm0, %v209_v56, 0 }
  0x6e   : > { %3253 = vmatprep.subr.bf16.mxu0 %v3252_v63  ;;  %v427_v22 = vsub.f32 %v3859_v45, %v426_v5  ;;  %v421_v27 = vsub.f32 %v3863_v47, %v420_v6  ;;  %v4346_v31 = vand.u32 4294901760, %v3947_v12  ;;  %v433_v33 = vsub.f32 %v3865_v48, %v432_v14 }
  0x6f   : > { %v3254_v30 = vpack.c.bf16 %v410_v11, %v398_v51  ;;  %v3964_v34 = vand.u32 4294901760, %v237_v29  ;;  %v416_v36 = vand.u32 4294901760, %v415_v20  ;;  %v438_v43 = vand.u32 4294901760, %v3867_v50 }
  0x70   : > { %336 = vmatmul.mubr.f32.gmra.mrb[2].mxu0 %v335_v7  ;;  %v428_v37 = vand.u32 4294901760, %v427_v22  ;;  %v422_v42 = vand.u32 4294901760, %v421_v27  ;;  %v345_v49 = vsub.f32 %v3947_v12, %v4346_v31  ;;  %v434_v51 = vand.u32 4294901760, %v433_v33 }
  0x71   : > { %3255 = vmatpush1.bf16.msra.mxu0 %v3254_v30  ;;  %341 = vmatprep.mubr.f32.mxu0 %v3648_v0  ;;  %v3972_v52 = vsub.f32 %v237_v29, %v3964_v34  ;;  %v4348_v56 = vand.u32 4294901760, %v3877_v58  ;;  %v439_v7 = vsub.f32 %v3867_v50, %v438_v43  ;;  %v4347_v11 = vand.u32 4294901760, %v3879_v59 }
  0x72   : > { %v3256_v63 = vpack.c.bf16 %v428_v37, %v416_v36  ;;  %v456_v20 = vand.u32 4294901760, %v3885_v62  ;;  %v346_v22 = vand.u32 4294901760, %v345_v49  ;;  %v3258_v27 = vpack.c.bf16 %v434_v51, %v422_v42 }
  0x73   : > { %v355_v30 = vand.u32 4294901760, %v3972_v52  ;;  %v451_v29 = vsub.f32 %v3877_v58, %v4348_v56  ;;  %v440_v33 = vand.u32 4294901760, %v439_v7  ;;  %v445_v36 = vsub.f32 %v3879_v59, %v4347_v11 }
  0x74   : > { %3257 = vmatprep.subr.bf16.mxu0 %v3256_v63  ;;  %v457_v37 = vsub.f32 %v3885_v62, %v456_v20  ;;  %347 = vmatmul.mubr.f32.gmra.mrb[4].mxu0 %v346_v22  ;;  %v3264_v11 = vpack.c.bf16 %v3831_v18, %v3829_v17  ;;  %v3266_v22 = vpack.c.bf16 %v3837_v24, %v3833_v19 }
  0x75   : > { %v356_v42 = vsub.f32 %v3972_v52, %v355_v30  ;;  %v452_v49 = vand.u32 4294901760, %v451_v29  ;;  %3259 = vmatpush1.bf16.msra.mxu0 %v3258_v27  ;;  %352 = vmatprep.mubr.f32.mxu0 %v3648_v0  ;;  %v446_v51 = vand.u32 4294901760, %v445_v36  ;;  %v3268_v27 = vpack.c.bf16 %v3844_v28, %v3841_v26 }
  0x76   : > { %v458_v63 = vand.u32 4294901760, %v457_v37  ;;  %v3270_v29 = vpack.c.bf16 %v3852_v40, %v3850_v39  ;;  %v3296_v36 = vpack.c.bf16 %v378_v55, %v366_v54  ;;  %v3298_v37 = vpack.c.bf16 %v384_v4, %v372_v3 }
  0x77   : > { %v357_v7 = vand.u32 4294901760, %v356_v42  ;;  %v3260_v31 = vpack.c.bf16 %v452_v49, %v440_v33  ;;  %v3278_v33 = vpack.c.bf16 %v3885_v62, %v3879_v59  ;;  %v3300_v17 = vpack.c.bf16 %v402_v13, %v390_v9 }
  0x78   : > { %v3262_v56 = vpack.c.bf16 %v458_v63, %v446_v51  ;;  %v3302_v18 = vpack.c.bf16 %v408_v35, %v396_v21  ;;  %v3304_v19 = vpack.c.bf16 %v426_v5, %v414_v1  ;;  %v3306_v24 = vpack.c.bf16 %v432_v14, %v420_v6 }
  0x79   : > { %358 = vmatmul.mubr.f32.gmra.mrb[6].mxu0 %v357_v7  ;;  %3261 = vmatprep.subr.bf16.mxu0 %v3260_v31  ;;  %v3272_v31 = vpack.c.bf16 %v3859_v45, %v3854_v41  ;;  %v4360_v26 = vand.u32 4294901760, %v3877_v58  ;;  %v4361_v39 = vand.u32 4294901760, %v3947_v12  ;;  %v4362_v40 = vand.u32 4294901760, %v3879_v59 }
  0x7a   : > { %3263 = vmatpush1.bf16.msra.mxu0 %v3262_v56  ;;  %508 = vmatprep.mubr.f32.mxu0 %v3648_v0  ;;  %v3274_v56 = vpack.c.bf16 %v3865_v48, %v3863_v47 }
  0x7b   : > { %3265 = vmatprep.subr.bf16.mxu0 %v3264_v11  ;;  %v3276_v11 = vpack.c.bf16 %v3877_v58, %v3867_v50  ;;  %v3308_v28 = vpack.c.bf16 %v4360_v26, %v438_v43  ;;  %v3310_v41 = vpack.c.bf16 %v456_v20, %v4362_v40 }
  0x7d   : > { %510 = vmatmul.mubr.f32.vlgmr.msra.gmra.mrb[0].mxu0 %v3881_v60 }
  0x7e   : > { %3267 = vmatpush1.bf16.msra.mxu0 %v3266_v22  ;;  %515 = vmatprep.mubr.f32.mxu0 %v3648_v0 }
  0x7f   : > { %3269 = vmatprep.subr.bf16.mxu0 %v3268_v27 }
  0x81   : > { %517 = vmatmul.mubr.f32.gmra.mrb[2].mxu0 %v3900_v8 }
  0x82   : > { %3271 = vmatpush1.bf16.msra.mxu0 %v3270_v29  ;;  %522 = vmatprep.mubr.f32.mxu0 %v3648_v0 }
  0x83   : > { %3273 = vmatprep.subr.bf16.mxu0 %v3272_v31 }
  0x85   : > { %524 = vmatmul.mubr.f32.gmra.mrb[4].mxu0 %v3939_v53 }
  0x86   : > { %3275 = vmatpush1.bf16.msra.mxu0 %v3274_v56  ;;  %529 = vmatprep.mubr.f32.mxu0 %v3648_v0 }
  0x87   : > { %3277 = vmatprep.subr.bf16.mxu0 %v3276_v11 }
  0x89   : > { %531 = vmatmul.mubr.f32.gmra.mrb[6].mxu0 %v3964_v34 }
  0x8a   : > { %3279 = vmatpush1.bf16.msra.mxu0 %v3278_v33  ;;  %633 = vmatprep.mubr.f32.mxu0 %v3648_v0 }
  0x8b   : > { %3281 = vmatprep.subr.bf16.mxu0 %v3827_v16 }
  0x8d   : > { %636 = vmatmul.mubr.f32.vlgmr.msra.gmra.mrb[0].mxu0 %v3894_v2 }
  0x8e   : > { %3283 = vmatpush1.bf16.msra.mxu0 %v3835_v23  ;;  %641 = vmatprep.mubr.f32.mxu0 %v3648_v0 }
  0x8f   : > { %3285 = vmatprep.subr.bf16.mxu0 %v3839_v25 }
  0x91   : > { %644 = vmatmul.mubr.f32.gmra.mrb[2].mxu0 %v3913_v15 }
  0x92   : > { %3287 = vmatpush1.bf16.msra.mxu0 %v3848_v38  ;;  %649 = vmatprep.mubr.f32.mxu0 %v3648_v0 }
  0x93   : > { %3289 = vmatprep.subr.bf16.mxu0 %v3857_v44 }
  0x95   : > { %652 = vmatmul.mubr.f32.gmra.mrb[4].mxu0 %v3947_v12 }
  0x96   : > { %3291 = vmatpush1.bf16.msra.mxu0 %v3861_v46  ;;  %657 = vmatprep.mubr.f32.mxu0 %v3648_v0 }
  0x97   : > { %3293 = vmatprep.subr.bf16.mxu0 %v3875_v57 }
  0x99   : > { %660 = vmatmul.mubr.f32.gmra.mrb[6].mxu0 %v3972_v52 }
  0x9a   : > { %3295 = vmatpush1.bf16.msra.mxu0 %v3883_v61  ;;  %746 = vmatprep.mubr.f32.mxu0 %v3648_v0 }
  0x9b   : > { %3297 = vmatprep.subr.bf16.mxu0 %v3296_v36 }
  0x9d   : > { %750 = vmatmul.mubr.f32.vlgmr.msra.gmra.mrb[0].mxu0 %v322_v10 }
  0x9e   : > { %3299 = vmatpush1.bf16.msra.mxu0 %v3298_v37  ;;  %755 = vmatprep.mubr.f32.mxu0 %v3648_v0 }
  0x9f   : > { %3301 = vmatprep.subr.bf16.mxu0 %v3300_v17 }
  0xa1   : > { %759 = vmatmul.mubr.f32.gmra.mrb[2].mxu0 %v333_v32 }
  0xa2   : > { %3303 = vmatpush1.bf16.msra.mxu0 %v3302_v18  ;;  %764 = vmatprep.mubr.f32.mxu0 %v3648_v0 }
  0xa3   : > { %3305 = vmatprep.subr.bf16.mxu0 %v3304_v19 }
  0xa5   : > { %768 = vmatmul.mubr.f32.gmra.mrb[4].mxu0 %v4361_v39 }
  0xa6   : > { %3307 = vmatpush1.bf16.msra.mxu0 %v3306_v24  ;;  %773 = vmatprep.mubr.f32.mxu0 %v3648_v0 }
  0xa7   : > { %3309 = vmatprep.subr.bf16.mxu0 %v3308_v28 }
  0xa9   : > { %777 = vmatmul.mubr.f32.gmra.mrb[6].mxu0 %v355_v30 }
  0xaa   : > { %3311 = vmatpush1.bf16.msra.mxu0 %v3310_v41  ;;  %895 = vmatprep.mubr.f32.mxu0 %v3648_v0 }
  0xab   : > { %3313 = vmatprep.subr.bf16.mxu0 %v3827_v16  ;;  %v1033_v16 = vld [vmem:[%s4341_s2] sm:$0xff] }
  0xad   : > { %897 = vmatmul.mubr.f32.vlgmr.msra.gmra.mrb[0].mxu0 %v3881_v60 }
  0xae   : > { %3315 = vmatpush1.bf16.msra.mxu0 %v3835_v23  ;;  %902 = vmatprep.mubr.f32.mxu0 %v3648_v0  ;;  %v1037_v23 = vsel %vm1035_vm1, %v1033_v16, 0 }
  0xaf   : > { %3317 = vmatprep.subr.bf16.mxu0 %v3839_v25  ;;  %v1034_v25 = vld [vmem:[%s4341_s2 + $0x8] sm:$0xff] }
  0xb1   : > { %904 = vmatmul.mubr.f32.gmra.mrb[2].mxu0 %v3900_v8 }
  0xb2   : > { %3319 = vmatpush1.bf16.msra.mxu0 %v3848_v38  ;;  %909 = vmatprep.mubr.f32.mxu0 %v3648_v0  ;;  %v4109_v38 = vand.u32 4294901760, %v1037_v23 }
  0xb3   : > { %3321 = vmatprep.subr.bf16.mxu0 %v3857_v44  ;;  %v1040_v44 = vsel %vm1035_vm1, %v1034_v25, 0 }
  0xb4   : > { %v4112_v45 = vsub.f32 %v1037_v23, %v4109_v38 }
  0xb5   : > { %911 = vmatmul.mubr.f32.gmra.mrb[4].mxu0 %v3939_v53 }
  0xb6   : > { %3323 = vmatpush1.bf16.msra.mxu0 %v3861_v46  ;;  %916 = vmatprep.mubr.f32.mxu0 %v3648_v0  ;;  %v4114_v46 = vand.u32 4294901760, %v1040_v44  ;;  %v4117_v47 = vand.u32 4294901760, %v4112_v45 }
  0xb7   : > { %3325 = vmatprep.subr.bf16.mxu0 %v3875_v57 }
  0xb8   : > { %v4120_v48 = vsub.f32 %v1040_v44, %v4114_v46  ;;  %v1112_v50 = vsub.f32 %v4112_v45, %v4117_v47 }
  0xb9   : > { %918 = vmatmul.mubr.f32.gmra.mrb[6].mxu0 %v3964_v34 }
  0xba   : > { %3327 = vmatpush1.bf16.msra.mxu0 %v3883_v61  ;;  %1004 = vmatprep.mubr.f32.mxu0 %v3648_v0  ;;  %v4125_v54 = vand.u32 4294901760, %v4120_v48 }
  0xbc   : > { %v1123_v61 = vsub.f32 %v4120_v48, %v4125_v54 }
  0xbd   : > { %1006 = vmatmul.mubr.f32.vlgmr.msra.gmra.mrb[0].mxu0 %v3881_v60  ;;  %v4129_v60 = vand.u32 4294901760, %v1112_v50 }
  0xbe   : > { %1011 = vmatprep.mubr.f32.mxu0 %v3648_v0  ;;  %v4138_v10 = vand.u32 4294901760, %v1123_v61 }
  0xc1   : > { %1013 = vmatmul.mubr.f32.gmra.mrb[2].mxu0 %v3900_v8 }
  0xc2   : > { %1018 = vmatprep.mubr.f32.mxu0 %v3648_v0 }
  0xc5   : > { %1020 = vmatmul.mubr.f32.gmra.mrb[4].mxu0 %v3939_v53 }
  0xc6   : > { %1025 = vmatprep.mubr.f32.mxu0 %v3648_v0 }
  0xc9   : > { %1027 = vmatmul.mubr.f32.gmra.mrb[6].mxu0 %v3964_v34 }
  0xca   : > { %2747 = vmatprep.mubr.f32.mxu0 %v3648_v0 }
 0x190   : > { %v1007_v55 = vpop.f32.mrb[0].mxu0 }
 0x191   : > { %v4127_v57 = vand.u32 4294901760, %v1007_v55  ;;  %v1009_v58 = vpop.f32.mrb[1].mxu0 }
 0x192   : > { %v1042_v59 = vand.u32 4294901760, %v1009_v58 }
 0x193   : > { %v1138_v62 = vsub.f32 %v1007_v55, %v4127_v57 }
 0x194   : > { %v1132_v2 = vsub.f32 %v1009_v58, %v1042_v59  ;;  %v4134_v3 = vpop.f32.mrb[2].mxu0  ;;  %1043 = vmatprep.subr.mxu1 %v1042_v59 }
 0x195   : > { %v1139_v4 = vand.u32 4294901760, %v1138_v62  ;;  %v1016_v8 = vpop.f32.mrb[3].mxu0  ;;  %1045 = vmatpush1.msra.mxu1 %v4127_v57  ;;  %v4178_v7 = vand.u32 4294901760, %v4134_v3 }
 0x196   : > { %v1133_v9 = vand.u32 4294901760, %v1132_v2  ;;  %1114 = vmatmul.mubr.f32.vlgmr.msra.gmra.mrb[0].mxu1 %v4129_v60  ;;  %v4165_v51 = vand.u32 4294901760, %v1016_v8 }
 0x197   : > { %v1140_v13 = vsub.f32 %v1138_v62, %v1139_v4  ;;  %1119 = vmatprep.mubr.f32.mxu1 %v3648_v0  ;;  %v1652_v27 = vsub.f32 %v4134_v3, %v4178_v7 }
 0x198   : > { %v4141_v15 = vpop.f32.mrb[4].mxu0  ;;  %v1134_v21 = vsub.f32 %v1132_v2, %v1133_v9  ;;  %v1646_v63 = vsub.f32 %v1016_v8, %v4165_v51 }
 0x199   : > { %v4143_v32 = vpop.f32.mrb[5].mxu0  ;;  %v1141_v53 = vand.u32 4294901760, %v1140_v13  ;;  %v1653_v31 = vand.u32 4294901760, %v1652_v27  ;;  %v2072_v17 = vand.u32 4294901760, %v4141_v15 }
 0x19a   : > { %1125 = vmatmul.mubr.f32.gmra.mrb[2].mxu1 %v4138_v10  ;;  %v1135_v35 = vand.u32 4294901760, %v1134_v21  ;;  %v1647_v22 = vand.u32 4294901760, %v1646_v63  ;;  %v2070_v36 = vand.u32 4294901760, %v4143_v32 }
 0x19b   : > { %1205 = vmatprep.mubr.f32.mxu1 %v3648_v0  ;;  %v1654_v11 = vsub.f32 %v1652_v27, %v1653_v31  ;;  %v2166_v19 = vsub.f32 %v4141_v15, %v2072_v17 }
 0x19c   : > { %v1028_v1 = vpop.f32.mrb[6].mxu0  ;;  %1136 = vmatprep.subr.mxu1 %v1135_v35  ;;  %v1648_v29 = vsub.f32 %v1646_v63, %v1647_v22  ;;  %v2160_v37 = vsub.f32 %v4143_v32, %v2070_v36 }
 0x19d   : > { %v4147_v5 = vand.u32 4294901760, %v1028_v1  ;;  %v1030_v6 = vpop.f32.mrb[7].mxu0  ;;  %1142 = vmatpush1.msra.mxu1 %v1141_v53  ;;  %v1655_v33 = vand.u32 4294901760, %v1654_v11  ;;  %v2167_v26 = vand.u32 4294901760, %v2166_v19 }
 0x19e   : > { %v4149_v12 = vand.u32 4294901760, %v1030_v6  ;;  %1207 = vmatmul.mubr.f32.vlgmr.msra.gmra.mrb[0].mxu1 %v4109_v38  ;;  %1222 = vmatprep.subr.mxu1 %v1132_v2  ;;  %v1649_v56 = vand.u32 4294901760, %v1648_v29  ;;  %v2161_v18 = vand.u32 4294901760, %v2160_v37 }
 0x19f   : > { %v2680_v14 = vsub.f32 %v1028_v1, %v4147_v5  ;;  %1225 = vmatpush1.msra.mxu1 %v1138_v62  ;;  %1212 = vmatprep.mubr.f32.mxu1 %v3648_v0  ;;  %v2168_v39 = vsub.f32 %v2166_v19, %v2167_v26 }
 0x1a0   : > { %v2674_v34 = vsub.f32 %v1030_v6, %v4149_v12  ;;  %1306 = vmatprep.subr.mxu1 %v1042_v59  ;;  %v2162_v24 = vsub.f32 %v2160_v37, %v2161_v18 }
 0x1a1   : > { %v2681_v43 = vand.u32 4294901760, %v2680_v14  ;;  %v2169_v40 = vand.u32 4294901760, %v2168_v39 }
 0x1a2   : > { %v2675_v52 = vand.u32 4294901760, %v2674_v34  ;;  %1214 = vmatmul.mubr.f32.gmra.mrb[2].mxu1 %v4114_v46  ;;  %v2163_v28 = vand.u32 4294901760, %v2162_v24 }
 0x1a3   : > { %v2682_v20 = vsub.f32 %v2680_v14, %v2681_v43  ;;  %1288 = vmatprep.mubr.f32.mxu1 %v3648_v0 }
 0x1a4   : > { %v2676_v30 = vsub.f32 %v2674_v34, %v2675_v52 }
 0x1a5   : > { %v2683_v49 = vand.u32 4294901760, %v2682_v20 }
 0x1a6   : > { %1291 = vmatmul.mubr.f32.vlgmr.msra.gmra.mrb[0].mxu1 %v4112_v45  ;;  %v2677_v42 = vand.u32 4294901760, %v2676_v30 }
 0x1a7   : > { %1308 = vmatpush1.msra.mxu1 %v4127_v57  ;;  %1296 = vmatprep.mubr.f32.mxu1 %v3648_v0 }
 0x1a8   : > { %1393 = vmatprep.subr.mxu1 %v1133_v9  ;;  %2678 = vmatprep.subr.mxu0 %v2677_v42 }
 0x1a9   : > { %2684 = vmatpush1.msra.mxu0 %v2683_v49 }
 0x1aa   : > { %1299 = vmatmul.mubr.f32.gmra.mrb[2].mxu1 %v4120_v48  ;;  %2749 = vmatmul.mubr.f32.vlgmr.msra.gmra.mrb[8].mxu0 %v4109_v38 }
 0x1ab   : > { %2764 = vmatprep.subr.mxu0 %v2674_v34  ;;  %1371 = vmatprep.mubr.f32.mxu1 %v3648_v0 }
 0x1ac   : > { %2767 = vmatpush1.msra.mxu0 %v2680_v14  ;;  %2754 = vmatprep.mubr.f32.mxu0 %v3648_v0 }
 0x1ad   : > { %2848 = vmatprep.subr.mxu0 %v4149_v12 }
 0x1ae   : > { %1375 = vmatmul.mubr.f32.vlgmr.msra.gmra.mrb[0].mxu1 %v4117_v47  ;;  %2756 = vmatmul.mubr.f32.gmra.mrb[10].mxu0 %v4114_v46 }
 0x1af   : > { %1397 = vmatpush1.msra.mxu1 %v1139_v4  ;;  %1380 = vmatprep.mubr.f32.mxu1 %v3648_v0 }
 0x1b0   : > { %1476 = vmatprep.subr.mxu1 %v1042_v59  ;;  %2830 = vmatprep.mubr.f32.mxu0 %v3648_v0 }
 0x1b2   : > { %1384 = vmatmul.mubr.f32.gmra.mrb[2].mxu1 %v4125_v54  ;;  %2833 = vmatmul.mubr.f32.vlgmr.msra.gmra.mrb[8].mxu0 %v4112_v45 }
 0x1b3   : > { %2850 = vmatpush1.msra.mxu0 %v4147_v5  ;;  %1460 = vmatprep.mubr.f32.mxu1 %v3648_v0 }
 0x1b4   : > { %2935 = vmatprep.subr.mxu0 %v2675_v52  ;;  %2838 = vmatprep.mubr.f32.mxu0 %v3648_v0 }
 0x1b6   : > { %1462 = vmatmul.mubr.f32.vlgmr.msra.gmra.mrb[0].mxu1 %v4109_v38  ;;  %2841 = vmatmul.mubr.f32.gmra.mrb[10].mxu0 %v4120_v48 }
 0x1b7   : > { %1478 = vmatpush1.msra.mxu1 %v4127_v57  ;;  %1467 = vmatprep.mubr.f32.mxu1 %v3648_v0 }
 0x1b8   : > { %1557 = vmatprep.subr.mxu1 %v4165_v51  ;;  %2913 = vmatprep.mubr.f32.mxu0 %v3648_v0 }
 0x1ba   : > { %1469 = vmatmul.mubr.f32.gmra.mrb[2].mxu1 %v4114_v46  ;;  %2917 = vmatmul.mubr.f32.vlgmr.msra.gmra.mrb[8].mxu0 %v4117_v47 }
 0x1bb   : > { %2939 = vmatpush1.msra.mxu0 %v2681_v43  ;;  %1541 = vmatprep.mubr.f32.mxu1 %v3648_v0 }
 0x1bc   : > { %3018 = vmatprep.subr.mxu0 %v4149_v12  ;;  %2922 = vmatprep.mubr.f32.mxu0 %v3648_v0 }
 0x1be   : > { %1543 = vmatmul.mubr.f32.vlgmr.msra.gmra.mrb[0].mxu1 %v4109_v38  ;;  %2926 = vmatmul.mubr.f32.gmra.mrb[10].mxu0 %v4125_v54 }
 0x1bf   : > { %1559 = vmatpush1.msra.mxu1 %v4178_v7  ;;  %1548 = vmatprep.mubr.f32.mxu1 %v3648_v0 }
 0x1c0   : > { %1650 = vmatprep.subr.mxu1 %v1649_v56  ;;  %3002 = vmatprep.mubr.f32.mxu0 %v3648_v0 }
 0x1c2   : > { %1550 = vmatmul.mubr.f32.gmra.mrb[2].mxu1 %v4114_v46  ;;  %3004 = vmatmul.mubr.f32.vlgmr.msra.gmra.mrb[8].mxu0 %v4109_v38 }
 0x1c3   : > { %3020 = vmatpush1.msra.mxu0 %v4147_v5  ;;  %1622 = vmatprep.mubr.f32.mxu1 %v3648_v0 }
 0x1c4   : > { %3009 = vmatprep.mubr.f32.mxu0 %v3648_v0 }
 0x1c6   : > { %1628 = vmatmul.mubr.f32.vlgmr.msra.gmra.mrb[4].mxu1 %v4129_v60  ;;  %3011 = vmatmul.mubr.f32.gmra.mrb[10].mxu0 %v4114_v46 }
 0x1c7   : > { %1656 = vmatpush1.msra.mxu1 %v1655_v33  ;;  %1633 = vmatprep.mubr.f32.mxu1 %v3648_v0 }
 0x1c8   : > { %1736 = vmatprep.subr.mxu1 %v1646_v63  ;;  %3083 = vmatprep.mubr.f32.mxu0 %v3648_v0 }
 0x1ca   : > { %1639 = vmatmul.mubr.f32.gmra.mrb[6].mxu1 %v4138_v10  ;;  %3085 = vmatmul.mubr.f32.vlgmr.msra.gmra.mrb[8].mxu0 %v4109_v38 }
 0x1cb   : > { %1719 = vmatprep.mubr.f32.mxu1 %v3648_v0  ;;  %3090 = vmatprep.mubr.f32.mxu0 %v3648_v0 }
 0x1ce   : > { %1721 = vmatmul.mubr.f32.vlgmr.msra.gmra.mrb[4].mxu1 %v4109_v38  ;;  %3092 = vmatmul.mubr.f32.gmra.mrb[10].mxu0 %v4114_v46 }
 0x1cf   : > { %1739 = vmatpush1.msra.mxu1 %v1652_v27  ;;  %1726 = vmatprep.mubr.f32.mxu1 %v3648_v0 }
 0x1d0   : > { %1820 = vmatprep.subr.mxu1 %v4165_v51 }
 0x1d2   : > { %1728 = vmatmul.mubr.f32.gmra.mrb[6].mxu1 %v4114_v46 }
 0x1d3   : > { %1802 = vmatprep.mubr.f32.mxu1 %v3648_v0 }
 0x1d6   : > { %1805 = vmatmul.mubr.f32.vlgmr.msra.gmra.mrb[4].mxu1 %v4112_v45 }
 0x1d7   : > { %1822 = vmatpush1.msra.mxu1 %v4178_v7  ;;  %1810 = vmatprep.mubr.f32.mxu1 %v3648_v0 }
 0x1d8   : > { %1907 = vmatprep.subr.mxu1 %v1647_v22 }
 0x1da   : > { %1813 = vmatmul.mubr.f32.gmra.mrb[6].mxu1 %v4120_v48 }
 0x1db   : > { %1885 = vmatprep.mubr.f32.mxu1 %v3648_v0 }
 0x1de   : > { %1889 = vmatmul.mubr.f32.vlgmr.msra.gmra.mrb[4].mxu1 %v4117_v47 }
 0x1df   : > { %1911 = vmatpush1.msra.mxu1 %v1653_v31  ;;  %1894 = vmatprep.mubr.f32.mxu1 %v3648_v0 }
 0x1e0   : > { %1990 = vmatprep.subr.mxu1 %v4165_v51 }
 0x1e2   : > { %1898 = vmatmul.mubr.f32.gmra.mrb[6].mxu1 %v4125_v54 }
 0x1e3   : > { %1974 = vmatprep.mubr.f32.mxu1 %v3648_v0 }
 0x1e6   : > { %1976 = vmatmul.mubr.f32.vlgmr.msra.gmra.mrb[4].mxu1 %v4109_v38 }
 0x1e7   : > { %1992 = vmatpush1.msra.mxu1 %v4178_v7  ;;  %1981 = vmatprep.mubr.f32.mxu1 %v3648_v0 }
 0x1e8   : > { %2071 = vmatprep.subr.mxu1 %v2070_v36 }
 0x1ea   : > { %1983 = vmatmul.mubr.f32.gmra.mrb[6].mxu1 %v4114_v46 }
 0x1eb   : > { %2055 = vmatprep.mubr.f32.mxu1 %v3648_v0 }
 0x1ee   : > { %2057 = vmatmul.mubr.f32.vlgmr.msra.gmra.mrb[4].mxu1 %v4109_v38 }
 0x1ef   : > { %2073 = vmatpush1.msra.mxu1 %v2072_v17  ;;  %2062 = vmatprep.mubr.f32.mxu1 %v3648_v0 }
 0x1f0   : > { %2164 = vmatprep.subr.mxu1 %v2163_v28 }
 0x1f2   : > { %2064 = vmatmul.mubr.f32.gmra.mrb[6].mxu1 %v4114_v46 }
 0x1f3   : > { %2136 = vmatprep.mubr.f32.mxu1 %v3648_v0 }
 0x1f6   : > { %2142 = vmatmul.mubr.f32.vlgmr.msra.gmra.mrb[8].mxu1 %v4129_v60 }
 0x1f7   : > { %2170 = vmatpush1.msra.mxu1 %v2169_v40  ;;  %2147 = vmatprep.mubr.f32.mxu1 %v3648_v0 }
 0x1f8   : > { %2250 = vmatprep.subr.mxu1 %v2160_v37 }
 0x1fa   : > { %2153 = vmatmul.mubr.f32.gmra.mrb[10].mxu1 %v4138_v10 }
 0x1fb   : > { %2233 = vmatprep.mubr.f32.mxu1 %v3648_v0 }
 0x1fe   : > { %2235 = vmatmul.mubr.f32.vlgmr.msra.gmra.mrb[8].mxu1 %v4109_v38 }
 0x1ff   : > { %2253 = vmatpush1.msra.mxu1 %v2166_v19  ;;  %2240 = vmatprep.mubr.f32.mxu1 %v3648_v0 }
 0x200   : > { %2334 = vmatprep.subr.mxu1 %v2070_v36 }
 0x202   : > { %2242 = vmatmul.mubr.f32.gmra.mrb[10].mxu1 %v4114_v46 }
 0x203   : > { %2316 = vmatprep.mubr.f32.mxu1 %v3648_v0 }
 0x206   : > { %2319 = vmatmul.mubr.f32.vlgmr.msra.gmra.mrb[8].mxu1 %v4112_v45 }
 0x207   : > { %2336 = vmatpush1.msra.mxu1 %v2072_v17  ;;  %2324 = vmatprep.mubr.f32.mxu1 %v3648_v0 }
 0x208   : > { %2421 = vmatprep.subr.mxu1 %v2161_v18 }
 0x20a   : > { %2327 = vmatmul.mubr.f32.gmra.mrb[10].mxu1 %v4120_v48 }
 0x20b   : > { %2399 = vmatprep.mubr.f32.mxu1 %v3648_v0 }
 0x20e   : > { %2403 = vmatmul.mubr.f32.vlgmr.msra.gmra.mrb[8].mxu1 %v4117_v47 }
 0x20f   : > { %2425 = vmatpush1.msra.mxu1 %v2167_v26  ;;  %2408 = vmatprep.mubr.f32.mxu1 %v3648_v0 }
 0x210   : > { %2504 = vmatprep.subr.mxu1 %v2070_v36 }
 0x212   : > { %2412 = vmatmul.mubr.f32.gmra.mrb[10].mxu1 %v4125_v54 }
 0x213   : > { %2488 = vmatprep.mubr.f32.mxu1 %v3648_v0 }
 0x216   : > { %2490 = vmatmul.mubr.f32.vlgmr.msra.gmra.mrb[8].mxu1 %v4109_v38 }
 0x217   : > { %2506 = vmatpush1.msra.mxu1 %v2072_v17  ;;  %2495 = vmatprep.mubr.f32.mxu1 %v3648_v0 }
 0x218   : > { %2585 = vmatprep.subr.mxu1 %v4149_v12 }
 0x21a   : > { %2497 = vmatmul.mubr.f32.gmra.mrb[10].mxu1 %v4114_v46 }
 0x21b   : > { %2569 = vmatprep.mubr.f32.mxu1 %v3648_v0 }
 0x21e   : > { %2571 = vmatmul.mubr.f32.vlgmr.msra.gmra.mrb[8].mxu1 %v4109_v38 }
 0x21f   : > { %2587 = vmatpush1.msra.mxu1 %v4147_v5  ;;  %2576 = vmatprep.mubr.f32.mxu1 %v3648_v0 }
 0x222   : > { %2578 = vmatmul.mubr.f32.gmra.mrb[10].mxu1 %v4114_v46 }
 0x223   : > { %2650 = vmatprep.mubr.f32.mxu1 %v3648_v0 }
 0x226   : > { %2656 = vmatmul.mubr.f32.vlgmr.msra.gmra.mrb[12].mxu1 %v4129_v60 }
 0x227   : > { %2661 = vmatprep.mubr.f32.mxu1 %v3648_v0 }
 0x22a   : > { %2667 = vmatmul.mubr.f32.gmra.mrb[14].mxu1 %v4138_v10 }
 0x291   : > { %v1544_v41 = vpop.f32.mrb[0].mxu1 }
 0x292   : > { %3098 = vst [vmem:[%s4270_s5] sm:$0xff] %v1544_v41  ;;  %v1546_v16 = vpop.f32.mrb[1].mxu1 }
 0x293   : > { %3099 = vst [vmem:[%s4270_s5 + $0x8] sm:$0xff] %v1546_v16 }
 0x295   : > { %v1551_v23 = vpop.f32.mrb[2].mxu1 }
 0x296   : > { %3100 = vst [vmem:[%s4270_s5 + $0x10] sm:$0xff] %v1551_v23  ;;  %v1553_v0 = vpop.f32.mrb[3].mxu1 }
 0x297   : > { %3101 = vst [vmem:[%s4270_s5 + $0x18] sm:$0xff] %v1553_v0 }
 0x29d   : > { %v3086_v25 = vpop.f32.mrb[8].mxu0 }
 0x29e   : > { %v3088_v38 = vpop.f32.mrb[9].mxu0 }
 0x2a1   : > { %v3093_v44 = vpop.f32.mrb[10].mxu0 }
 0x2a2   : > { %v3095_v45 = vpop.f32.mrb[11].mxu0 }
 0x2c1   : > { %v2058_v46 = vpop.f32.mrb[4].mxu1 }
 0x2c2   : > { %3102 = vst [vmem:[%s4270_s5 + $0x20] sm:$0xff] %v2058_v46  ;;  %v2060_v47 = vpop.f32.mrb[5].mxu1 }
 0x2c3   : > { %3103 = vst [vmem:[%s4270_s5 + $0x28] sm:$0xff] %v2060_v47 }
 0x2c5   : > { %v2065_v48 = vpop.f32.mrb[6].mxu1 }
 0x2c6   : > { %3104 = vst [vmem:[%s4270_s5 + $0x30] sm:$0xff] %v2065_v48  ;;  %v2067_v50 = vpop.f32.mrb[7].mxu1 }
 0x2c7   : > { %3105 = vst [vmem:[%s4270_s5 + $0x38] sm:$0xff] %v2067_v50 }
 0x2f1   : > { %v2572_v54 = vpop.f32.mrb[8].mxu1 }
 0x2f2   : > { %3106 = vst [vmem:[%s4270_s5 + $0x40] sm:$0xff] %v2572_v54  ;;  %v2574_v55 = vpop.f32.mrb[9].mxu1 }
 0x2f3   : > { %3107 = vst [vmem:[%s4270_s5 + $0x48] sm:$0xff] %v2574_v55 }
 0x2f5   : > { %v2579_v57 = vpop.f32.mrb[10].mxu1 }
 0x2f6   : > { %3108 = vst [vmem:[%s4270_s5 + $0x50] sm:$0xff] %v2579_v57  ;;  %v2581_v58 = vpop.f32.mrb[11].mxu1 }
 0x2f7   : > { %3109 = vst [vmem:[%s4270_s5 + $0x58] sm:$0xff] %v2581_v58 }
 0x2f9   : > { %v2657_v59 = vpop.f32.mrb[12].mxu1 }
 0x2fa   : > { %v3328_v60 = vadd.f32 %v3086_v25, %v2657_v59  ;;  %v2659_v61 = vpop.f32.mrb[13].mxu1 }
 0x2fb   : > { %v3329_v62 = vadd.f32 %v3088_v38, %v2659_v61 }
 0x2fc   : > { %3110 = vst [vmem:[%s4270_s5 + $0x60] sm:$0xff] %v3328_v60 }
 0x2fd   : > { %3111 = vst [vmem:[%s4270_s5 + $0x68] sm:$0xff] %v3329_v62  ;;  %v2668_v2 = vpop.f32.mrb[14].mxu1 }
 0x2fe   : > { %v3330_v3 = vadd.f32 %v3093_v44, %v2668_v2  ;;  %v2670_v4 = vpop.f32.mrb[15].mxu1 }
 0x2ff   : > { %v3331_v8 = vadd.f32 %v3095_v45, %v2670_v4 }
 0x300   : > { %3112 = vst [vmem:[%s4270_s5 + $0x70] sm:$0xff] %v3330_v3 }
 0x301   : > { %3113 = vst [vmem:[%s4270_s5 + $0x78] sm:$0xff] %v3331_v8 }
 0x302   : > { %3583 = shalt.err (!%p3580_p7)
}
 0x303   : > { %s3584_s8 = scalar_lea.hbm %s4291_s29, 2048  ;;  %s3588_s20 = scalar_lea.hbm %s4342_s3, 4096 }
 0x304   : > { %p3585_p9 = scmp.ne.s32.totalorder %s4291_s29, %s3584_s8  ;;  %p3589_p5 = scmp.lt.u32.totalorder %s4291_s29, %s4342_s3 }
 0x305   : > { %p3590_p11 = scmp.lt.u32.totalorder %s3588_s20, %s3584_s8  ;;  %p3592_p4 = scmp.lt.u32.totalorder %s3584_s8, %s4291_s29 }
 0x306   : > { %p3586_p2 = pnand %p3585_p9, %p3763_p12 }
 0x307   : > { %p3591_p1 = por %p3590_p11, %p3589_p5 }
 0x308   : > { %p3587_p0 = pneg %p3586_p2 }
 0x309   : > { %p3593_p6 = por %p3592_p4, %p3591_p1 }
 0x30b   : > { %p3594_p8 = pnand %p3593_p6, %p3587_p0 }
 0x30d   : > { %3597 = shalt.err (!%p3594_p8)
}
 0x30e   : > { %s3650_s26 = smov 256   ;;  %s3651_s5 = smov 16  }
 0x30f   : > { %3454 = dma.vmem_to_hbm [thread:$0]  (%p3763_p12), %s4293_s11, 2048, %s4291_s29, %s3115_s16, %s3650_s26, %s3650_s26, %s3651_s5  }
 0x310 PF: > { %s3144_s10 = sand.u32 1, %s3628_s12   ;;  %p4363_p10 = scmp.ne.s32.totalorder %s4350_s19, 0 }
 0x311   : > { %p4364_p13 = scmp.ge.s32.totalorder %s3640_s15, 2  ;;  %s3145_s27 = scalar_lea.sflag [#allocation4], %s3144_s10 }
 0x313   : > { %p3465_p3 = pnand %p4364_p13, %p4363_p10 }
 0x315   : > { %3623 = dma.done.wait (!%p3465_p3), %s3145_s27, 2048  }
 0x316   : > { %3625 = vsyncadd (!%p3465_p3), %s3145_s27, 4294965248  ;;  %p17_p7 = scmp.ge.s32.totalorder %s3728_s24, 4   ;;  %s4365_s12 = smov %s3632_s13 }
 0x317   : > { %s4366_s13 = smov %s3636_s14  ;;  %s4367_s14 = smov %s3759_s17 }
 0x318   : > { %s4368_s15 = smov %s3728_s24  ;;  %19 = sbr.rel (!%p17_p7) target bundleno = 6 (0x6), region = 81 }
 0x31f   :  { %3150 = vsyncpa [#allocation3], 1 }
 0x320   :  { %3152 = vsyncpa [#allocation3 + $0x1], 1 }
 0x321   :  { %3153 = vsyncpa [#allocation6], 1 }
 0x322   :  { %3154 = vsyncpa [#allocation4], 1 }
 0x323   :  { %3156 = vsyncpa [#allocation4 + $0x1], 1 }

</bundles_post_ra>
